<compile_context>
chip_gen: v7x
topology: tpu7x:2x2x1
jax: 0.10.0
libtpu: 0.0.40
codegen_flags: <defaults>
</compile_context>

<pallas_src>
import functools

import jax
import jax.numpy as jnp
from jax import lax
from jax.experimental import pallas as pl
from jax.experimental.pallas import tpu as pltpu


def _elu(x):
    # NOTE: jnp.expm1 would be marginally more accurate near 0 (per review), but
    # exp(x) - 1 keeps us on the guaranteed-supported Mosaic exp lowering; the
    # difference is <= ~1e-7 in f32 here.
    return jnp.where(x > 0.0, x, jnp.exp(x) - 1.0)


def _iaf_layer_body(x, w1, b1, w2, b2, w3m, b3m, w3l, b3l, *,
                    idx, dim, stable, loga_min, loga_max):
    """One IAF layer on an in-VMEM (TB, dim) f32 tile. Returns (z, clipped loga)."""
    mm_dtype = w1.dtype  # matmuls run in the weights' dtype; MXU accumulates in f32
    h1 = jnp.dot(x.astype(mm_dtype), w1, preferred_element_type=jnp.float32) + b1
    h1 = _elu(h1)
    h2 = jnp.dot(h1.astype(mm_dtype), w2, preferred_element_type=jnp.float32) + b2
    h2 = _elu(h2)
    h2m = h2.astype(mm_dtype)
    # split heads: two lane-dense outputs, no non-aligned lane slicing of a 2*dim slab
    mu = jnp.dot(h2m, w3m, preferred_element_type=jnp.float32) + b3m
    loga = jnp.dot(h2m, w3l, preferred_element_type=jnp.float32) + b3l
    # forward value of `loga + (loga.clamp(...) - loga).detach()` is just the clamp
    loga = jnp.clip(loga, loga_min, loga_max)

    sigma = jnp.exp(loga)
    if stable:
        z = x * sigma + (1.0 - sigma) * mu          # Eq (14)
    else:
        z = x * sigma + mu                          # Eq (10)

    # odd layer index: swap columns 0 and 1. Static branch; a 2-column permutation on a
    # sub-vreg-wide tile. Kept in-kernel so fused layers never round-trip z to HBM.
    if (idx % 2 == 1) and (dim > 1):
        col = lax.broadcasted_iota(jnp.int32, z.shape, 1)
        z0 = z[:, 0:1]
        z1 = z[:, 1:2]
        z = jnp.where(col == 0, z1, jnp.where(col == 1, z0, z))
    return z, loga


def _iaf_stack_kernel(x_ref, w1_ref, b1_ref, w2_ref, b2_ref,
                      w3m_ref, b3m_ref, w3l_ref, b3l_ref,
                      z_ref, lj_ref, *,
                      n_layers, first_idx, dim, stable, loga_min, loga_max):
    z = x_ref[...].astype(jnp.float32)
    loga_acc = jnp.zeros(z.shape, jnp.float32)       # sum_l loga_l, reduced once at end
    # Fused layer loop: z / loga_acc stay in VMEM/vregs between layers (no per-layer
    # pallas_call launch, no HBM writeback of intermediates). n_layers is small/static.
    for l in range(n_layers):
        z, loga = _iaf_layer_body(
            z, w1_ref[l], b1_ref[l], w2_ref[l], b2_ref[l],
            w3m_ref[l], b3m_ref[l], w3l_ref[l], b3l_ref[l],
            idx=first_idx + l, dim=dim, stable=stable,
            loga_min=loga_min, loga_max=loga_max)
        loga_acc = loga_acc + loga

    z_ref[...] = z.astype(z_ref.dtype)

    # Lane-dense log-Jacobian: contract the dim axis against a ones-vector on the MXU
    # (same NT dot_general class as q @ k^T), so the per-row sums land directly on the
    # lane axis of a (1, 1, TB) block -> unmasked store instead of a (TB, 1) column.
    tb = z_ref.shape[0]
    ones_row = jnp.ones((1, dim), jnp.float32)
    lj_row = lax.dot_general(ones_row, loga_acc,
                             dimension_numbers=(((1,), (1,)), ((), ())),
                             preferred_element_type=jnp.float32)    # (1, TB)
    lj_ref[...] = lj_row.reshape(1, 1, tb)


def _round_up(a, b):
    return (a + b - 1) // b * b


def iaf_flow_forward(x, stacked_params, *, first_idx, stable,
                     loga_min_clip=-5.0, loga_max_clip=3.0,
                     batch_tile=256, matmul_dtype=None):
    """Fused stack of IAF layers in one pallas_call.

    stacked_params = (w1, b1, w2, b2, w3_mu, b3_mu, w3_loga, b3_loga), each with a
    leading layer axis L; layer l uses idx = first_idx + l.
    Returns (z, log_jacobian) where log_jacobian is the sum over layers, shape (B,).
    """
    B, dim = x.shape
    w1, b1, w2, b2, w3m, b3m, w3l, b3l = stacked_params
    L, _, hidden = w1.shape

    if matmul_dtype is not None:   # bf16 weights: ~3x MXU throughput on v6e/v7x
        w1, w2, w3m, w3l = (w.astype(matmul_dtype) for w in (w1, w2, w3m, w3l))
    params = (w1, b1, w2, b2, w3m, b3m, w3l, b3l)

    # Batch tiling: TB is a multiple of 8 (sublanes); pad B up to a multiple of TB
    # (zero rows are computed but sliced off below -> correct tail handling).
    TB = min(_round_up(B, 8), _round_up(batch_tile, 8))
    B_pad = _round_up(B, TB)
    num_tiles = B_pad // TB
    x_p = jnp.pad(x, ((0, B_pad - B), (0, 0))) if B_pad != B else x

    kernel = functools.partial(
        _iaf_stack_kernel, n_layers=L, first_idx=first_idx, dim=dim, stable=stable,
        loga_min=float(loga_min_clip), loga_max=float(loga_max_clip))

    def resident(arr):   # full-array block + constant index -> stays resident in VMEM
        nd = arr.ndim
        return pl.BlockSpec(arr.shape, lambda i: (0,) * nd)

    flops = int(2 * B_pad * L * (dim * hidden + hidden * hidden + 2 * hidden * dim))
    transcendentals = int(B_pad * L * (2 * hidden + dim))
    bytes_accessed = int(
        x_p.size * x_p.dtype.itemsize
        + sum(int(p.size) * p.dtype.itemsize for p in params)
        + B_pad * dim * x.dtype.itemsize          # z
        + num_tiles * TB * 4)                     # log-Jacobian

    z_p, lj_p = pl.pallas_call(
        kernel,
        out_shape=(
            jax.ShapeDtypeStruct((B_pad, dim), x.dtype),
            jax.ShapeDtypeStruct((num_tiles, 1, TB), jnp.float32),
        ),
        grid=(num_tiles,),
        in_specs=[pl.BlockSpec((TB, dim), lambda i: (i, 0))]
                 + [resident(p) for p in params],
        out_specs=(
            pl.BlockSpec((TB, dim), lambda i: (i, 0)),
            pl.BlockSpec((1, 1, TB), lambda i: (i, 0, 0)),
        ),
        compiler_params=pltpu.CompilerParams(
            dimension_semantics=("parallel",),
            # Explicit scoped-VMEM budget; fits every generation (v7x physical VMEM is
            # 64 MiB; v5e's default scoped limit is only 16 MiB).
            vmem_limit_bytes=32 * 1024 * 1024,
        ),
        cost_estimate=pl.CostEstimate(
            flops=flops, transcendentals=transcendentals,
            bytes_accessed=bytes_accessed),
    )(x_p, *params)

    return z_p[:B], lj_p.reshape(B_pad)[:B]


def iaf_forward(x, params, *, idx, stable, loga_min_clip=-5.0, loga_max_clip=3.0,
                batch_tile=256, matmul_dtype=None):
    """Single InverseAutoregressiveLayer forward (== the PyTorch module)."""
    stacked = tuple(p[None] for p in params)
    return iaf_flow_forward(
        x, stacked, first_idx=idx, stable=stable,
        loga_min_clip=loga_min_clip, loga_max_clip=loga_max_clip,
        batch_tile=batch_tile, matmul_dtype=matmul_dtype)


def make_made_params(key, dim, hidden, dtype=jnp.float32):
    """Deterministic MADE parameters, autoregressive masks pre-applied, split w3."""
    k1, k2, k3, k4 = jax.random.split(key, 4)
    in_deg = jnp.arange(1, dim + 1)                                # (dim,)
    hid_deg = (jnp.arange(hidden) % max(dim - 1, 1)) + 1           # (hidden,)
    m1 = (hid_deg[None, :] >= in_deg[:, None]).astype(dtype)       # (dim, hidden)
    m2 = (hid_deg[None, :] >= hid_deg[:, None]).astype(dtype)      # (hidden, hidden)
    m3 = (in_deg[None, :] > hid_deg[:, None]).astype(dtype)        # (hidden, dim)

    w1 = jax.random.normal(k1, (dim, hidden), dtype) * (1.0 / jnp.sqrt(dim)) * m1
    w2 = jax.random.normal(k2, (hidden, hidden), dtype) * (1.0 / jnp.sqrt(hidden)) * m2
    w3m = jax.random.normal(k3, (hidden, dim), dtype) * (1.0 / jnp.sqrt(hidden)) * m3
    w3l = jax.random.normal(k4, (hidden, dim), dtype) * (1.0 / jnp.sqrt(hidden)) * m3
    b1 = jnp.zeros((1, hidden), dtype)
    b2 = jnp.zeros((1, hidden), dtype)
    b3m = jnp.zeros((1, dim), dtype)
    b3l = jnp.zeros((1, dim), dtype)
    return (w1, b1, w2, b2, w3m, b3m, w3l, b3l)


def _reference_layer(x, params, *, idx, stable, loga_min_clip=-5.0, loga_max_clip=3.0):
    w1, b1, w2, b2, w3m, b3m, w3l, b3l = params
    h1 = _elu(x @ w1 + b1)
    h2 = _elu(h1 @ w2 + b2)
    mu = h2 @ w3m + b3m
    loga = jnp.clip(h2 @ w3l + b3l, loga_min_clip, loga_max_clip)
    sigma = jnp.exp(loga)
    z = x * sigma + ((1.0 - sigma) * mu if stable else mu)
    if idx % 2 == 1 and x.shape[1] > 1:
        z = jnp.concatenate([z[:, 1:2], z[:, 0:1], z[:, 2:]], axis=1)
    return z, jnp.sum(loga, axis=1)


if __name__ == "__main__":
    B, DIM, HIDDEN = 8, 16, 32
    key = jax.random.PRNGKey(0)
    kx, kx2, kp0, kp1, kp2 = jax.random.split(key, 5)
    x = jax.random.normal(kx, (B, DIM), jnp.float32)

    # --- single layer (== the PyTorch module), odd idx -> exercises the column swap.
    params = make_made_params(kp0, DIM, HIDDEN)
    z, lj = iaf_forward(x, params, idx=1, stable=False)
    jax.block_until_ready((z, lj))
    z_ref, lj_ref = _reference_layer(x, params, idx=1, stable=False)
    assert jnp.allclose(z, z_ref, atol=1e-4, rtol=1e-4), "single-layer z mismatch"
    assert jnp.allclose(lj, lj_ref, atol=1e-4, rtol=1e-4), "single-layer log_jacobian mismatch"

    # --- fused 3-layer flow in ONE pallas_call (stable variant, both swap parities),
    #     non-multiple-of-tile batch + small batch_tile to exercise padding and the grid.
    B2 = 20
    x2 = jax.random.normal(kx2, (B2, DIM), jnp.float32)
    layer_params = [make_made_params(k, DIM, HIDDEN) for k in (kp0, kp1, kp2)]
    stacked = tuple(jnp.stack(ps, axis=0) for ps in zip(*layer_params))
    z3, lj3 = iaf_flow_forward(x2, stacked, first_idx=0, stable=True, batch_tile=8)
    jax.block_until_ready((z3, lj3))
    z3_ref = x2
    lj3_ref = jnp.zeros((B2,), jnp.float32)
    for l, p in enumerate(layer_params):
        z3_ref, lj_l = _reference_layer(z3_ref, p, idx=l, stable=True)
        lj3_ref = lj3_ref + lj_l
    assert jnp.allclose(z3, z3_ref, atol=2e-3, rtol=2e-3), "fused-flow z mismatch"
    assert jnp.allclose(lj3, lj3_ref, atol=2e-3, rtol=2e-3), "fused-flow log_jacobian mismatch"

    # --- bf16-weight matmul path (v6e/v7x MXU friendly, f32 accumulate): loose sanity
    #     check only, since it is intentionally reduced precision.
    z_bf, lj_bf = iaf_forward(x, params, idx=1, stable=False, matmul_dtype=jnp.bfloat16)
    jax.block_until_ready((z_bf, lj_bf))
    assert bool(jnp.all(jnp.isfinite(z_bf))) and bool(jnp.all(jnp.isfinite(lj_bf)))
    assert float(jnp.max(jnp.abs(z_bf - z_ref))) < 1.0, "bf16 path diverged"

    print("KERNEL_OK")
</pallas_src>

<mosaic_0001>
module attributes {stable_mosaic.version = 11 : i64} {
  func.func @_iaf_stack_kernel(%arg0: i32, %arg1: memref<8x16xf32, #tpu.memory_space<vmem>>, %arg2: memref<1x16x32xf32, #tpu.memory_space<vmem>>, %arg3: memref<1x1x32xf32, #tpu.memory_space<vmem>>, %arg4: memref<1x32x32xf32, #tpu.memory_space<vmem>>, %arg5: memref<1x1x32xf32, #tpu.memory_space<vmem>>, %arg6: memref<1x32x16xf32, #tpu.memory_space<vmem>>, %arg7: memref<1x1x16xf32, #tpu.memory_space<vmem>>, %arg8: memref<1x32x16xf32, #tpu.memory_space<vmem>>, %arg9: memref<1x1x16xf32, #tpu.memory_space<vmem>>, %arg10: memref<8x16xf32, #tpu.memory_space<vmem>>, %arg11: memref<1x1x8xf32, #tpu.memory_space<vmem>>) attributes {dimension_semantics = [#tpu.dimension_semantics<parallel>], iteration_bounds = array<i64: 1>, scalar_prefetch = 0 : i64, scratch_operands = 0 : i64, tpu.core_type = #tpu.core_type<tc>, window_params = [{transform_indices = @transform_0, window_bounds = array<i64: 8, 16>}, {pipeline_mode = #tpu.pipeline_mode<synchronous>, transform_indices = @transform_1, window_bounds = array<i64: 1, 16, 32>}, {pipeline_mode = #tpu.pipeline_mode<synchronous>, transform_indices = @transform_2, window_bounds = array<i64: 1, 1, 32>}, {pipeline_mode = #tpu.pipeline_mode<synchronous>, transform_indices = @transform_3, window_bounds = array<i64: 1, 32, 32>}, {pipeline_mode = #tpu.pipeline_mode<synchronous>, transform_indices = @transform_4, window_bounds = array<i64: 1, 1, 32>}, {pipeline_mode = #tpu.pipeline_mode<synchronous>, transform_indices = @transform_5, window_bounds = array<i64: 1, 32, 16>}, {pipeline_mode = #tpu.pipeline_mode<synchronous>, transform_indices = @transform_6, window_bounds = array<i64: 1, 1, 16>}, {pipeline_mode = #tpu.pipeline_mode<synchronous>, transform_indices = @transform_7, window_bounds = array<i64: 1, 32, 16>}, {pipeline_mode = #tpu.pipeline_mode<synchronous>, transform_indices = @transform_8, window_bounds = array<i64: 1, 1, 16>}, {transform_indices = @transform_9, window_bounds = array<i64: 8, 16>}, {transform_indices = @transform_10, window_bounds = array<i64: 1, 1, 8>}]} {
    %c0 = arith.constant 0 : index
    %c0_0 = arith.constant 0 : index
    %0 = vector.load %arg1[%c0, %c0_0] : memref<8x16xf32, #tpu.memory_space<vmem>>, vector<8x16xf32>
    %cst = arith.constant 0.000000e+00 : f32
    %1 = vector.broadcast %cst : f32 to vector<8x16xf32>
    %c0_1 = arith.constant 0 : index
    %c0_2 = arith.constant 0 : index
    %c0_3 = arith.constant 0 : index
    %2 = vector.load %arg2[%c0_1, %c0_2, %c0_3] : memref<1x16x32xf32, #tpu.memory_space<vmem>>, vector<1x16x32xf32>
    %3 = vector.shape_cast %2 : vector<1x16x32xf32> to vector<16x32xf32>
    %c0_4 = arith.constant 0 : index
    %c0_5 = arith.constant 0 : index
    %c0_6 = arith.constant 0 : index
    %4 = vector.load %arg3[%c0_4, %c0_5, %c0_6] : memref<1x1x32xf32, #tpu.memory_space<vmem>>, vector<1x1x32xf32>
    %5 = vector.shape_cast %4 : vector<1x1x32xf32> to vector<1x32xf32>
    %c0_7 = arith.constant 0 : index
    %c0_8 = arith.constant 0 : index
    %c0_9 = arith.constant 0 : index
    %6 = vector.load %arg4[%c0_7, %c0_8, %c0_9] : memref<1x32x32xf32, #tpu.memory_space<vmem>>, vector<1x32x32xf32>
    %7 = vector.shape_cast %6 : vector<1x32x32xf32> to vector<32x32xf32>
    %c0_10 = arith.constant 0 : index
    %c0_11 = arith.constant 0 : index
    %c0_12 = arith.constant 0 : index
    %8 = vector.load %arg5[%c0_10, %c0_11, %c0_12] : memref<1x1x32xf32, #tpu.memory_space<vmem>>, vector<1x1x32xf32>
    %9 = vector.shape_cast %8 : vector<1x1x32xf32> to vector<1x32xf32>
    %c0_13 = arith.constant 0 : index
    %c0_14 = arith.constant 0 : index
    %c0_15 = arith.constant 0 : index
    %10 = vector.load %arg6[%c0_13, %c0_14, %c0_15] : memref<1x32x16xf32, #tpu.memory_space<vmem>>, vector<1x32x16xf32>
    %11 = vector.shape_cast %10 : vector<1x32x16xf32> to vector<32x16xf32>
    %c0_16 = arith.constant 0 : index
    %c0_17 = arith.constant 0 : index
    %c0_18 = arith.constant 0 : index
    %12 = vector.load %arg7[%c0_16, %c0_17, %c0_18] : memref<1x1x16xf32, #tpu.memory_space<vmem>>, vector<1x1x16xf32>
    %13 = vector.shape_cast %12 : vector<1x1x16xf32> to vector<1x16xf32>
    %c0_19 = arith.constant 0 : index
    %c0_20 = arith.constant 0 : index
    %c0_21 = arith.constant 0 : index
    %14 = vector.load %arg8[%c0_19, %c0_20, %c0_21] : memref<1x32x16xf32, #tpu.memory_space<vmem>>, vector<1x32x16xf32>
    %15 = vector.shape_cast %14 : vector<1x32x16xf32> to vector<32x16xf32>
    %c0_22 = arith.constant 0 : index
    %c0_23 = arith.constant 0 : index
    %c0_24 = arith.constant 0 : index
    %16 = vector.load %arg9[%c0_22, %c0_23, %c0_24] : memref<1x1x16xf32, #tpu.memory_space<vmem>>, vector<1x1x16xf32>
    %17 = vector.shape_cast %16 : vector<1x1x16xf32> to vector<1x16xf32>
    %cst_25 = arith.constant dense<0.000000e+00> : vector<8x32xf32>
    %18 = tpu.matmul %0, %3, %cst_25 {dimension_numbers = #tpu.dot_dimension_numbers<[1], [0], [0], [1], [0, 0, 1, 1], [], []>} : vector<8x16xf32>, vector<16x32xf32>, vector<8x32xf32> -> vector<8x32xf32>
    %19 = vector.broadcast %5 : vector<1x32xf32> to vector<8x32xf32>
    %20 = arith.addf %18, %19 : vector<8x32xf32>
    %cst_26 = arith.constant 0.000000e+00 : f32
    %21 = vector.broadcast %cst_26 : f32 to vector<8x32xf32>
    %22 = arith.cmpf ogt, %20, %21 : vector<8x32xf32>
    %23 = math.exp %20 : vector<8x32xf32>
    %cst_27 = arith.constant 1.000000e+00 : f32
    %24 = vector.broadcast %cst_27 : f32 to vector<8x32xf32>
    %25 = arith.subf %23, %24 : vector<8x32xf32>
    %26 = arith.select %22, %20, %25 : vector<8x32xi1>, vector<8x32xf32>
    %cst_28 = arith.constant dense<0.000000e+00> : vector<8x32xf32>
    %27 = tpu.matmul %26, %7, %cst_28 {dimension_numbers = #tpu.dot_dimension_numbers<[1], [0], [0], [1], [0, 0, 1, 1], [], []>} : vector<8x32xf32>, vector<32x32xf32>, vector<8x32xf32> -> vector<8x32xf32>
    %28 = vector.broadcast %9 : vector<1x32xf32> to vector<8x32xf32>
    %29 = arith.addf %27, %28 : vector<8x32xf32>
    %cst_29 = arith.constant 0.000000e+00 : f32
    %30 = vector.broadcast %cst_29 : f32 to vector<8x32xf32>
    %31 = arith.cmpf ogt, %29, %30 : vector<8x32xf32>
    %32 = math.exp %29 : vector<8x32xf32>
    %cst_30 = arith.constant 1.000000e+00 : f32
    %33 = vector.broadcast %cst_30 : f32 to vector<8x32xf32>
    %34 = arith.subf %32, %33 : vector<8x32xf32>
    %35 = arith.select %31, %29, %34 : vector<8x32xi1>, vector<8x32xf32>
    %cst_31 = arith.constant dense<0.000000e+00> : vector<8x16xf32>
    %36 = tpu.matmul %35, %11, %cst_31 {dimension_numbers = #tpu.dot_dimension_numbers<[1], [0], [0], [1], [0, 0, 1, 1], [], []>} : vector<8x32xf32>, vector<32x16xf32>, vector<8x16xf32> -> vector<8x16xf32>
    %37 = vector.broadcast %13 : vector<1x16xf32> to vector<8x16xf32>
    %38 = arith.addf %36, %37 : vector<8x16xf32>
    %cst_32 = arith.constant dense<0.000000e+00> : vector<8x16xf32>
    %39 = tpu.matmul %35, %15, %cst_32 {dimension_numbers = #tpu.dot_dimension_numbers<[1], [0], [0], [1], [0, 0, 1, 1], [], []>} : vector<8x32xf32>, vector<32x16xf32>, vector<8x16xf32> -> vector<8x16xf32>
    %40 = vector.broadcast %17 : vector<1x16xf32> to vector<8x16xf32>
    %41 = arith.addf %39, %40 : vector<8x16xf32>
    %cst_33 = arith.constant -5.000000e+00 : f32
    %cst_34 = arith.constant 3.000000e+00 : f32
    %42 = vector.broadcast %cst_33 : f32 to vector<8x16xf32>
    %43 = arith.maximumf %42, %41 : vector<8x16xf32>
    %44 = vector.broadcast %cst_34 : f32 to vector<8x16xf32>
    %45 = arith.minimumf %44, %43 : vector<8x16xf32>
    %46 = math.exp %45 : vector<8x16xf32>
    %47 = arith.mulf %0, %46 : vector<8x16xf32>
    %48 = arith.addf %47, %38 : vector<8x16xf32>
    %49 = tpu.iota {dimensions = array<i32: 1>} : vector<8x16xi32>
    %50 = vector.extract_strided_slice %48 {offsets = [0, 0], sizes = [8, 1], strides = [1, 1]} : vector<8x16xf32> to vector<8x1xf32>
    %51 = vector.extract_strided_slice %48 {offsets = [0, 1], sizes = [8, 1], strides = [1, 1]} : vector<8x16xf32> to vector<8x1xf32>
    %c0_i32 = arith.constant 0 : i32
    %52 = vector.broadcast %c0_i32 : i32 to vector<8x16xi32>
    %53 = arith.cmpi eq, %49, %52 : vector<8x16xi32>
    %c1_i32 = arith.constant 1 : i32
    %54 = vector.broadcast %c1_i32 : i32 to vector<8x16xi32>
    %55 = arith.cmpi eq, %49, %54 : vector<8x16xi32>
    %56 = vector.shape_cast %50 : vector<8x1xf32> to vector<8x1xf32>
    %57 = vector.broadcast %56 : vector<8x1xf32> to vector<8x16xf32>
    %58 = arith.select %55, %57, %48 : vector<8x16xi1>, vector<8x16xf32>
    %59 = vector.shape_cast %51 : vector<8x1xf32> to vector<8x1xf32>
    %60 = vector.broadcast %59 : vector<8x1xf32> to vector<8x16xf32>
    %61 = arith.select %53, %60, %58 : vector<8x16xi1>, vector<8x16xf32>
    %62 = arith.addf %1, %45 : vector<8x16xf32>
    %c0_35 = arith.constant 0 : index
    %c0_36 = arith.constant 0 : index
    %63 = vector.load %arg10[%c0_35, %c0_36] : memref<8x16xf32, #tpu.memory_space<vmem>>, vector<8x16xf32>
    tpu.vector_store %arg10[%c0_35, %c0_36], %61 {strides = array<i32>} : memref<8x16xf32, #tpu.memory_space<vmem>>, vector<8x16xf32>,
    %cst_37 = arith.constant 1.000000e+00 : f32
    %64 = vector.broadcast %cst_37 : f32 to vector<1x16xf32>
    %cst_38 = arith.constant dense<0.000000e+00> : vector<1x8xf32>
    %65 = tpu.matmul %64, %62, %cst_38 {dimension_numbers = #tpu.dot_dimension_numbers<[1], [1], [0], [0], [0, 0, 1, 0], [], []>} : vector<1x16xf32>, vector<8x16xf32>, vector<1x8xf32> -> vector<1x8xf32>
    %66 = vector.shape_cast %65 : vector<1x8xf32> to vector<1x1x8xf32>
    %c0_39 = arith.constant 0 : index
    %c0_40 = arith.constant 0 : index
    %c0_41 = arith.constant 0 : index
    %67 = vector.load %arg11[%c0_39, %c0_40, %c0_41] : memref<1x1x8xf32, #tpu.memory_space<vmem>>, vector<1x1x8xf32>
    tpu.vector_store %arg11[%c0_39, %c0_40, %c0_41], %66 {strides = array<i32>} : memref<1x1x8xf32, #tpu.memory_space<vmem>>, vector<1x1x8xf32>,
    return
  }
  func.func @transform_0(%arg0: i32) -> (i32, i32) {
    %c0_i32 = arith.constant 0 : i32
    %c0_i32_0 = arith.constant 0 : i32
    return %arg0, %c0_i32 : i32, i32
  }
  func.func @transform_1(%arg0: i32) -> (i32, i32, i32) {
    %c0_i32 = arith.constant 0 : i32
    %c0_i32_0 = arith.constant 0 : i32
    %c0_i32_1 = arith.constant 0 : i32
    %c0_i32_2 = arith.constant 0 : i32
    return %c0_i32, %c0_i32_0, %c0_i32_1 : i32, i32, i32
  }
  func.func @transform_2(%arg0: i32) -> (i32, i32, i32) {
    %c0_i32 = arith.constant 0 : i32
    %c0_i32_0 = arith.constant 0 : i32
    %c0_i32_1 = arith.constant 0 : i32
    %c0_i32_2 = arith.constant 0 : i32
    return %c0_i32, %c0_i32_0, %c0_i32_1 : i32, i32, i32
  }
  func.func @transform_3(%arg0: i32) -> (i32, i32, i32) {
    %c0_i32 = arith.constant 0 : i32
    %c0_i32_0 = arith.constant 0 : i32
    %c0_i32_1 = arith.constant 0 : i32
    %c0_i32_2 = arith.constant 0 : i32
    return %c0_i32, %c0_i32_0, %c0_i32_1 : i32, i32, i32
  }
  func.func @transform_4(%arg0: i32) -> (i32, i32, i32) {
    %c0_i32 = arith.constant 0 : i32
    %c0_i32_0 = arith.constant 0 : i32
    %c0_i32_1 = arith.constant 0 : i32
    %c0_i32_2 = arith.constant 0 : i32
    return %c0_i32, %c0_i32_0, %c0_i32_1 : i32, i32, i32
  }
  func.func @transform_5(%arg0: i32) -> (i32, i32, i32) {
    %c0_i32 = arith.constant 0 : i32
    %c0_i32_0 = arith.constant 0 : i32
    %c0_i32_1 = arith.constant 0 : i32
    %c0_i32_2 = arith.constant 0 : i32
    return %c0_i32, %c0_i32_0, %c0_i32_1 : i32, i32, i32
  }
  func.func @transform_6(%arg0: i32) -> (i32, i32, i32) {
    %c0_i32 = arith.constant 0 : i32
    %c0_i32_0 = arith.constant 0 : i32
    %c0_i32_1 = arith.constant 0 : i32
    %c0_i32_2 = arith.constant 0 : i32
    return %c0_i32, %c0_i32_0, %c0_i32_1 : i32, i32, i32
  }
  func.func @transform_7(%arg0: i32) -> (i32, i32, i32) {
    %c0_i32 = arith.constant 0 : i32
    %c0_i32_0 = arith.constant 0 : i32
    %c0_i32_1 = arith.constant 0 : i32
    %c0_i32_2 = arith.constant 0 : i32
    return %c0_i32, %c0_i32_0, %c0_i32_1 : i32, i32, i32
  }
  func.func @transform_8(%arg0: i32) -> (i32, i32, i32) {
    %c0_i32 = arith.constant 0 : i32
    %c0_i32_0 = arith.constant 0 : i32
    %c0_i32_1 = arith.constant 0 : i32
    %c0_i32_2 = arith.constant 0 : i32
    return %c0_i32, %c0_i32_0, %c0_i32_1 : i32, i32, i32
  }
  func.func @transform_9(%arg0: i32) -> (i32, i32) {
    %c0_i32 = arith.constant 0 : i32
    %c0_i32_0 = arith.constant 0 : i32
    return %arg0, %c0_i32 : i32, i32
  }
  func.func @transform_10(%arg0: i32) -> (i32, i32, i32) {
    %c0_i32 = arith.constant 0 : i32
    %c0_i32_0 = arith.constant 0 : i32
    %c0_i32_1 = arith.constant 0 : i32
    return %arg0, %c0_i32, %c0_i32_0 : i32, i32, i32
  }
}

</mosaic_0001>

<bundles_post_ra>
// kernel: tpu_custom_call.1
= control target key start
LH: loop header
LB: loop body
LE: loop exit
PB: predicated region body
PF: predicated region fallthrough
CT: control target
= control target key end

     0   :  { %16 = vsyncpa [#allocation3], 0  ;;  %v671_v2 = vmov 0.0|0.0   ;;  %vm672_vm0 = vmmov 0   ;;  %v673_v4 = vmov 0.0   ;;  %s837_s0 = inlined_call_operand.vmem [shape: f32[8,16], index: 0, kind: input, shape index: {}]   ;;  %s838_s1 = inlined_call_operand.vmem [shape: f32[1,16,32], index: 1, kind: input, shape index: {}]   ;;  %s839_s2 = inlined_call_operand.vmem [shape: f32[1,1,32], index: 2, kind: input, shape index: {}]   ;;  %s840_s3 = inlined_call_operand.vmem [shape: f32[1,32,32], index: 3, kind: input, shape index: {}]   ;;  %s841_s4 = inlined_call_operand.vmem [shape: f32[1,1,32], index: 4, kind: input, shape index: {}]   ;;  %s842_s5 = inlined_call_operand.vmem [shape: f32[1,32,16], index: 5, kind: input, shape index: {}]   ;;  %s843_s6 = inlined_call_operand.vmem [shape: f32[1,1,16], index: 6, kind: input, shape index: {}]   ;;  %s844_s7 = inlined_call_operand.vmem [shape: f32[1,32,16], index: 7, kind: input, shape index: {}]   ;;  %s845_s8 = inlined_call_operand.vmem [shape: f32[1,1,16], index: 8, kind: input, shape index: {}]   ;;  %s846_s9 = inlined_call_operand.hbm [shape: f32[8,16], index: 9, kind: output, shape index: {0}]   ;;  %s847_s10 = inlined_call_operand.hbm [shape: f32[1,1,8], index: 10, kind: output, shape index: {1}]  }
   0x1   :  { %v37_v0 = vld [vmem:[%s838_s1] sm:$0xff]  ;;  %v38_v1 = vld [vmem:[%s838_s1 + $0x8] sm:$0xff]  ;;  %586 = vmatprep.subr.bf16.mxu0 %v671_v2  ;;  %545 = vmatprep.mubr.msk.f32.mxu0 %vm672_vm0, %v673_v4 }
   0x2   :  { %v587_v3 = vpack.c.bf16 %v38_v1, %v37_v0 }
   0x3   :  { %17 = vsyncpa [#allocation5], 0  ;;  %589 = vmatprep.subr.bf16.mxu1 %v671_v2  ;;  %556 = vmatprep.mubr.msk.f32.mxu1 %vm672_vm0, %v673_v4  ;;  %v747_v5 = vld [vmem:[%s837_s0] sm:$0xff]  ;;  %vm61_vm1 = vcmask 130048   ;;  %v41_v7 = vld [vmem:[%s840_s3 + $0x8] sm:$0xff]  ;;  %vm146_vm2 = vcmask 261120   ;;  %v386_v57 = vlaneseq }
   0x4   :  { %588 = vmatpush3.bf16.msra.mxu0 %v587_v3  ;;  %v40_v6 = vld [vmem:[%s840_s3] sm:$0xff]  ;;  %v42_v8 = vld [vmem:[%s840_s3 + $0x10] sm:$0xff]  ;;  %v43_v10 = vld [vmem:[%s840_s3 + $0x18] sm:$0xff]  ;;  %v674_v40 = vmov 0   ;;  %v675_v50 = vmov 1.0   ;;  %v676_v56 = vmov 1  }
   0x5   :  { %595 = vmatprep.subr.bf16.mxu0 %v671_v2  ;;  %v590_v9 = vpack.c.bf16 %v41_v7, %v40_v6  ;;  %v593_v11 = vpack.c.bf16 %v43_v10, %v42_v8  ;;  %v509_v12 = vld [vmem:[%s839_s2] ss:$0 sm:$0xff]  ;;  %v46_v21 = vld [vmem:[%s842_s5 + $0x8] sm:$0xff]  ;;  %v47_v26 = vld [vmem:[%s842_s5 + $0x10] sm:$0xff]  ;;  %615 = vset.pattern.permute.xlu0 %v674_v40  ;;  %v387_v58 = vand.u32 127, %v386_v57 }
   0x6   :  { %v45_v20 = vld [vmem:[%s842_s5] sm:$0xff]  ;;  %v51_v24 = vld [vmem:[%s844_s7 + $0x8] sm:$0xff]  ;;  %v48_v27 = vld [vmem:[%s842_s5 + $0x18] sm:$0xff] }
   0x7   :  { %546 = vmatmul.mubr.msk.f32.vlgmr.msra.gmra.mrb[0].mxu0 %vm61_vm1, %v747_v5  ;;  %591 = vmatpush3.bf16.msra.mxu1 %v590_v9  ;;  %v50_v22 = vld [vmem:[%s844_s7] sm:$0xff]  ;;  %v596_v23 = vpack.c.bf16 %v46_v21, %v45_v20  ;;  %v52_v28 = vld [vmem:[%s844_s7 + $0x10] sm:$0xff]  ;;  %v599_v29 = vpack.c.bf16 %v48_v27, %v47_v26  ;;  %v53_v30 = vld [vmem:[%s844_s7 + $0x18] sm:$0xff]  ;;  %vm389_vm5 = vcmp.eq.s32.totalorder %v387_v58, 1  ;;  %vm388_vm6 = vcmp.eq.s32.totalorder %v387_v58, 0 }
   0x8   :  { %567 = vmatprep.mubr.msk.f32.mxu0 %vm672_vm0, %v673_v4  ;;  %592 = vmatprep.subr.bf16.mxu1 %v671_v2  ;;  %v602_v25 = vpack.c.bf16 %v51_v24, %v50_v22  ;;  %v605_v31 = vpack.c.bf16 %v53_v30, %v52_v28  ;;  %v512_v32 = vld [vmem:[%s841_s4] ss:$0 sm:$0xff] }
   0x9   :  { %597 = vmatpush3.bf16.msra.mxu0 %v596_v23  ;;  %v517_v41 = vld [vmem:[%s845_s8] ss:$0 sm:$0xff]  ;;  %s677_s8 = smov [#allocation2]  }
   0xa   :  { %598 = vmatprep.subr.bf16.mxu0 %v671_v2  ;;  %v515_v51 = vld [vmem:[%s843_s6] ss:$0 sm:$0xff]  ;;  %s487_s23 = sshll.u32 %s677_s8, 4  ;;  %s488_s23 = int_to_ptr.vmem [resolvable:$true] %s487_s23 }
   0xb   :  { %594 = vmatpush3.bf16.msra.mxu1 %v593_v11  ;;  %s623_s6 = scalar_lea.vmem %s488_s23, 128  ;;  %p628_p1 = scmp.lt.s32.totalorder %s488_s23, %s488_s23 }
   0xc   :  { %601 = vmatprep.subr.bf16.mxu1 %v671_v2  ;;  %p624_p0 = scmp.ne.s32.totalorder %s488_s23, %s623_s6  ;;  %p629_p2 = scmp.lt.s32.totalorder %s623_s6, %s623_s6 }
   0xd   :  { %600 = vmatpush3.bf16.msra.mxu0 %v599_v29 }
   0xe   :  { %581 = vmatprep.subr.mxu0 %v673_v4  ;;  %p630_p3 = por %p629_p2, %p628_p1 }
  0x10   :  { %p631_p4 = pnand %p630_p3, %p624_p0 }
  0xda   :  { %v131_v13 = vpop.f32.mrb[0].mxu0 }
  0xdb   :  { %v132_v14 = vadd.f32 %v509_v12, %v131_v13  ;;  %v547_v15 = vpop.f32.mrb[1].mxu0 }
  0xdd   :  { %v136_v16 = vmul.f32 1.442695, %v132_v14  ;;  %vm135_vm3 = vcmp.gt.f32.partialorder %v132_v14, 0.0 }
  0xdf   :  { %617 = vpow2.f32 %v136_v16 }
  0xe9   :  { %v618_v17 = vpop.eup %617 }
  0xea   :  { %v511_v18 = vadd.f32 -1.0, %v618_v17 }
  0xec   :  { %v139_v19 = vsel %vm135_vm3, %v132_v14, %v511_v18 }
  0xed   :  { %557 = vmatmul.mubr.msk.f32.vlgmr.msra.gmra.mrb[0].mxu1 %vm146_vm2, %v139_v19 }
  0xee   :  { %578 = vmatprep.mubr.msk.f32.mxu1 %vm672_vm0, %v673_v4  ;;  %603 = vmatpush3.bf16.msra.mxu1 %v602_v25 }
  0xef   :  { %604 = vmatprep.subr.bf16.mxu1 %v671_v2 }
  0xf2   :  { %606 = vmatpush3.bf16.msra.mxu1 %v605_v31 }
 0x1c0   :  { %v216_v33 = vpop.f32.mrb[0].mxu1 }
 0x1c1   :  { %v217_v34 = vadd.f32 %v512_v32, %v216_v33  ;;  %v558_v35 = vpop.f32.mrb[1].mxu1 }
 0x1c3   :  { %v221_v36 = vmul.f32 1.442695, %v217_v34  ;;  %vm220_vm4 = vcmp.gt.f32.partialorder %v217_v34, 0.0 }
 0x1c5   :  { %619 = vpow2.f32 %v221_v36 }
 0x1cf   :  { %v620_v37 = vpop.eup %619 }
 0x1d0   :  { %v514_v38 = vadd.f32 -1.0, %v620_v37 }
 0x1d2   :  { %v224_v39 = vsel %vm220_vm4, %v217_v34, %v514_v38 }
 0x1d3   :  { %568 = vmatmul.mubr.msk.f32.vlgmr.msra.gmra.mrb[2].mxu0 %vm146_vm2, %v224_v39  ;;  %579 = vmatmul.mubr.msk.f32.vlgmr.msra.gmra.mrb[2].mxu1 %vm146_vm2, %v224_v39 }
 0x1d4   :  { %583 = vmatprep.mubr.msk.f32.mxu0 %vm672_vm0, %v673_v4 }
 0x2a6   :  { %v300_v42 = vpop.f32.mrb[2].mxu0  ;;  %v376_v43 = vpop.f32.mrb[2].mxu1 }
 0x2a7   :  { %v377_v44 = vadd.f32 %v517_v41, %v376_v43  ;;  %v569_v45 = vpop.f32.mrb[3].mxu0  ;;  %v580_v46 = vpop.f32.mrb[3].mxu1  ;;  %v301_v53 = vadd.f32 %v515_v51, %v300_v42 }
 0x2a9   :  { %v380_v47 = vmax.f32 %v377_v44, -5.0 }
 0x2ab   :  { %v381_v48 = vmin.f32 %v380_v47, 3.0 }
 0x2ad   :  { %v382_v49 = vmul.f32 1.442695, %v381_v48  ;;  %582 = vmatpush3.xpose.msk.msra.mxu0 %vm61_vm1, %v381_v48 }
 0x2af   :  { %621 = vpow2.f32 %v382_v49 }
 0x2b0   :  { %584 = vmatmul.mubr.msk.f32.vlgmr.msra.gmra.mrb[4].mxu0 %vm61_vm1, %v675_v50 }
 0x2b9   :  { %v622_v52 = vpop.eup %621 }
 0x2ba   :  { %v384_v54 = vmul.f32 %v622_v52, %v747_v5 }
 0x2bc   :  { %v385_v55 = vadd.f32 %v384_v54, %v301_v53 }
 0x2be   :  { %392 = vperm.xlu0 %615, %v385_v55  }
 0x2c2   :  { %616 = vset.pattern.permute.xlu0 %v676_v56 }
 0x2c3   :  { %397 = vperm.xlu0 %616, %v385_v55  }
 0x33d   :  { %v393_v59 = vpop.permute.xlu0 %392 }
 0x33e   :  { %v395_v60 = vsel %vm389_vm5, %v393_v59, %v385_v55 }
 0x342   :  { %v398_v61 = vpop.permute.xlu0 %397 }
 0x343   :  { %v400_v62 = vsel %vm388_vm6, %v398_v61, %v395_v60 }
 0x344   :  { %402 = vst.msk [vmem:[#allocation2] sm:$0xff] %vm61_vm1, %v400_v62 }
 0x345   :  { %634 = shalt.err (!%p631_p4)
}
 0x346   :  { %s635_s25 = scalar_lea.hbm %s846_s9, 128 }
 0x347   :  { %p636_p5 = scmp.ne.s32.totalorder %s846_s9, %s635_s25  ;;  %p639_p6 = scmp.lt.u32.totalorder %s635_s25, %s846_s9 }
 0x349   :  { %p641_p7 = pnand %p639_p6, %p636_p5 }
 0x34b   :  { %644 = shalt.err (!%p641_p7)
}
 0x34c   :  { %490 = dma.vmem_to_hbm [thread:$0]  %s488_s23, 128, %s846_s9, [#allocation3]   ;;  %vm479_vm7 = vcmask 57344  }
 0x34d   :  { %s678_s30 = smov [#allocation4]  }
 0x34e   :  { %s497_s11 = sshll.u32 %s678_s30, 4  ;;  %s498_s11 = int_to_ptr.vmem [resolvable:$true] %s497_s11 }
 0x34f   :  { %s645_s12 = scalar_lea.vmem %s498_s11, 16  ;;  %s649_s13 = scalar_lea.vmem %s498_s11, 32 }
 0x350   :  { %p646_p8 = scmp.ne.s32.totalorder %s498_s11, %s645_s12  ;;  %p650_p9 = scmp.lt.s32.totalorder %s498_s11, %s498_s11 }
 0x351   :  { %p651_p10 = scmp.lt.s32.totalorder %s649_s13, %s645_s12 }
 0x353   :  { %p652_p11 = por %p651_p10, %p650_p9 }
 0x355   :  { %p653_p12 = pnand %p652_p11, %p646_p8 }
 0x383   :  { %v475_v63 = vpop.f32.mrb[4].mxu0 }
 0x384   :  { %480 = vst.msk [vmem:[#allocation4] sm:$0x1] %vm479_vm7, %v475_v63  ;;  %v585_v0 = vpop.f32.mrb[5].mxu0 }
 0x385   :  { %656 = shalt.err (!%p653_p12)
}
 0x386   :  { %s657_s16 = scalar_lea.hbm %s847_s10, 16 }
 0x387   :  { %p658_p13 = scmp.ne.s32.totalorder %s847_s10, %s657_s16  ;;  %p661_p0 = scmp.lt.u32.totalorder %s657_s16, %s847_s10 }
 0x389   :  { %p663_p1 = pnand %p661_p0, %p658_p13 }
 0x38b   :  { %666 = shalt.err (!%p663_p1)
}
 0x38c   :  { %500 = dma.vmem_to_hbm [thread:$0]  %s498_s11, 16, %s847_s10, [#allocation5]  }
 0x38d   :  { %667 = dma.done.wait [#allocation3], 128  }
 0x38e   :  { %668 = vsyncadd [#allocation3], 4294967168 }
 0x38f   :  { %669 = dma.done.wait [#allocation5], 16  }
 0x390   :  { %670 = vsyncadd [#allocation5], 4294967280 }
 0x391   :  { %507 = vsyncpa [#allocation3], 1 }
 0x392   :  { %508 = vsyncpa [#allocation5], 1 }

</bundles_post_ra>
